<compile_context>
chip_gen: v5e
topology: v5e:2x2
jax: 0.10.0
libtpu: 0.0.40
codegen_flags: <defaults>
</compile_context>

<pallas_src>
import functools

import numpy as np
import jax
import jax.numpy as jnp
from jax import lax
from jax.experimental import pallas as pl
from jax.experimental.pallas import tpu as pltpu


# --------------------------- host-side (init) glue ---------------------------

class ImageScrambler:
    """Deterministic stand-in for the external ImageScrambler dependency.

    Semantics: scrambled_flat[i] = original_flat[key[i]] (a fixed spatial
    permutation of the pixels of a dim x dim image)."""

    def __init__(self, dim, seed=0):
        self.dim = dim
        rng = np.random.RandomState(seed)
        self.key = rng.permutation(dim * dim)

    def get_pos_pixel(self, index):
        index = np.asarray(index)
        return np.stack([index // self.dim, index % self.dim], axis=-1)

    def forward(self, arr):
        # arr: (B, C, dim, dim) numpy array
        B, C, H, W = arr.shape
        flat = arr.reshape(B, C, H * W)
        return flat[:, :, self.key].reshape(B, C, H, W)


def calculate_index_pool(dims, stride, padding, kernel_size):
    output_dims = (dims + 2 * padding - kernel_size) // stride + 1
    center_indices = np.zeros((output_dims, output_dims, 2), dtype=int)
    indices = np.arange(-padding + kernel_size // 2 - 1,
                        dims - padding + kernel_size // 2 - 1, stride)
    center_indices[:, :, 0], center_indices[:, :, 1] = np.meshgrid(
        indices, indices, indexing='ij')
    return center_indices


def build_gather_table(dim, kernel_size, stride, padding, perm, new_perm):
    """Precompute, for every output pixel, the k*k flat indices into the
    (scrambled) input spatial plane.  Mirrors DeformMaxPool2d.__init__ plus the
    per-(i,j) logic of forward (get_index_pool + retrieve_original_pixels)."""
    # TODO(synk): padding > 0 would index outside [0, dim) exactly like the
    # original torch module does; true -inf border padding is not implemented.
    assert padding == 0, "only padding=0 is supported (matches tested config)"
    output_dims = (dim + 2 * padding - (kernel_size - 1) - 1) // stride + 1
    index_positions = calculate_index_pool(dim, stride, padding, kernel_size)
    index_positions = np.transpose(index_positions, (2, 0, 1))            # (2, out, out)
    index_positions_ = new_perm.forward(index_positions[None])[0]         # disorder=True
    # retrieve_original_pixels: original position -> position in scrambled x
    inv_key = np.argsort(perm.key)    # inv_key[original_flat] = scrambled_flat
    kk = kernel_size * kernel_size
    idx = np.zeros((output_dims * output_dims, kk), dtype=np.int32)
    for i in range(output_dims):
        for j in range(output_dims):
            top = index_positions_[:, i, j]
            t = 0
            for di in range(kernel_size):
                for dj in range(kernel_size):
                    r, c = int(top[0]) + di, int(top[1]) + dj
                    idx[i * output_dims + j, t] = inv_key[r * dim + c]
                    t += 1
    return idx, output_dims


# ------------------------------- Pallas kernel -------------------------------

def _round_up(x, m):
    return (x + m - 1) // m * m


def _deform_maxpool_kernel(x_ref, oh_ref, o_ref, acc_ref, *, kk, tile_oo):
    # x_ref  : VMEM (TILE_BC, TILE_HW)       f32   B*C rows, spatial chunk on lanes
    # oh_ref : VMEM (TILE_HW, kk*TILE_OO)    bf16  precomputed one-hot tap slabs
    # o_ref  : VMEM (TILE_BC, TILE_OO)       f32   pooled output tile (lane-dense)
    # acc_ref: VMEM (TILE_BC, kk*TILE_OO)    f32   per-tap gather accumulator
    k = pl.program_id(2)

    @pl.when(k == 0)
    def _():
        acc_ref[...] = jnp.zeros_like(acc_ref)

    x = x_ref[...]
    # Exact 3-plane bf16 split of x: hi + mid + lo == x (bit-exact for f32
    # normals, since bf16 shares f32's exponent range and each residual fits).
    hi = x.astype(jnp.bfloat16)
    r1 = x - hi.astype(jnp.float32)
    mid = r1.astype(jnp.bfloat16)
    lo = (r1 - mid.astype(jnp.float32)).astype(jnp.bfloat16)

    oh = oh_ref[...]
    # One fused matmul per plane over all kk taps (N = kk*TILE_OO): each
    # one-hot column selects exactly one pixel, so the f32-accumulated sum of
    # the three bf16 planes reconstructs the gathered f32 value exactly.
    y = jnp.dot(hi, oh, preferred_element_type=jnp.float32)
    y = y + jnp.dot(mid, oh, preferred_element_type=jnp.float32)
    y = y + jnp.dot(lo, oh, preferred_element_type=jnp.float32)
    acc_ref[...] += y

    @pl.when(k == pl.num_programs(2) - 1)
    def _():
        acc = acc_ref[...]
        best = acc[:, 0:tile_oo]
        for t in range(1, kk):                      # static, small (k*k)
            best = jnp.maximum(best, acc[:, t * tile_oo:(t + 1) * tile_oo])
        o_ref[...] = best.astype(o_ref.dtype)


def deform_maxpool2d(x, idx_table, output_dims):
    """x: (B, C, H, W) float32 (already spatially scrambled by `perm`).
    idx_table: (OO, KK) int32 host-side gather table (flat spatial indices)."""
    B, C, H, W = x.shape
    HW, BC, OO = H * W, B * C, output_dims * output_dims
    KK = int(idx_table.shape[1])

    LANE, SUB = 128, 8

    # ---- OO tiling: lane-dense output stores ---------------------------------
    oo_lane = _round_up(OO, LANE)
    TILE_OO = min(oo_lane, 512)
    while oo_lane % TILE_OO != 0:
        TILE_OO -= LANE
    OO_pad = oo_lane
    n_oo = OO_pad // TILE_OO

    # ---- HW (contraction) tiling ----------------------------------------------
    # TODO(synk): when HW is large but not a multiple of 512, x would need
    # spatial padding to enable chunking; currently it stays fully resident.
    if HW > 4096 and HW % 512 == 0:
        TILE_HW = max(c for c in (4096, 2048, 1024, 512) if HW % c == 0)
    else:
        TILE_HW = HW
    n_hw = HW // TILE_HW

    # ---- BC tiling: large M to fill the MXU, clamped by a VMEM budget --------
    BC_pad = _round_up(BC, SUB)
    TILE_BC = min(BC_pad, 1024)

    def _footprint(tbc):
        return (tbc * TILE_HW * 4 * 2                 # x tile, double buffered
                + TILE_HW * KK * TILE_OO * 2 * 2      # one-hot tile, double buffered
                + tbc * TILE_OO * 4 * 2               # output tile, double buffered
                + tbc * KK * TILE_OO * 4              # f32 accumulator scratch
                + tbc * TILE_HW * 2 * 3               # bf16 plane temporaries
                + tbc * KK * TILE_OO * 4 * 2)         # matmul temporaries
    while TILE_BC > SUB and _footprint(TILE_BC) > 20 * 1024 * 1024:
        TILE_BC = max(SUB, (TILE_BC // 2) // SUB * SUB)
    BC_pad = _round_up(BC_pad, TILE_BC)

    # ---- x in natural (B*C, H*W) layout; pad only when unavoidable -----------
    x_l = x.reshape(BC, HW)
    if BC_pad != BC:
        # TODO(synk): padding only the last BC tile would avoid a full extra
        # HBM pass; at these sizes the whole-array pad is cheap enough.
        x_l = jnp.pad(x_l, ((0, BC_pad - BC), (0, 0)))

    # ---- host-precomputed bf16 one-hot gather slabs ---------------------------
    # Column layout: [OO tile j][tap t][local output o] so a single BlockSpec
    # dim indexed by j selects all kk tap slabs of that OO tile contiguously.
    idx_np = np.asarray(idx_table, dtype=np.int64)
    oh = np.zeros((HW, n_oo, KK, TILE_OO), dtype=np.float32)
    o_all = np.arange(OO)
    j_col, l_col = o_all // TILE_OO, o_all % TILE_OO
    for t in range(KK):
        oh[idx_np[:, t], j_col, t, l_col] = 1.0
    oh_dev = jnp.asarray(oh.reshape(HW, n_oo * KK * TILE_OO), dtype=jnp.bfloat16)

    kernel = functools.partial(_deform_maxpool_kernel, kk=KK, tile_oo=TILE_OO)
    out = pl.pallas_call(
        kernel,
        out_shape=jax.ShapeDtypeStruct((BC_pad, OO_pad), x.dtype),
        grid_spec=pltpu.PrefetchScalarGridSpec(
            num_scalar_prefetch=0,
            grid=(BC_pad // TILE_BC, n_oo, n_hw),
            in_specs=[
                pl.BlockSpec((TILE_BC, TILE_HW), lambda i, j, k: (i, k)),
                pl.BlockSpec((TILE_HW, KK * TILE_OO), lambda i, j, k: (k, j)),
            ],
            out_specs=pl.BlockSpec((TILE_BC, TILE_OO), lambda i, j, k: (i, j)),
            scratch_shapes=[pltpu.VMEM((TILE_BC, KK * TILE_OO), jnp.float32)],
        ),
        compiler_params=pltpu.CompilerParams(
            dimension_semantics=("parallel", "parallel", "arbitrary"),
            vmem_limit_bytes=32 * 1024 * 1024),
        cost_estimate=pl.CostEstimate(
            flops=2 * 3 * BC_pad * HW * KK * OO_pad,
            transcendentals=0,
            bytes_accessed=BC_pad * HW * 4 + HW * KK * OO_pad * 2 + BC_pad * OO_pad * 4),
    )(x_l, oh_dev)

    # Padded rows / lanes are exactly 0 and are sliced away here.
    return out[:BC, :OO].reshape(B, C, output_dims, output_dims)


# ----------------------------------- main ------------------------------------

if __name__ == "__main__":
    B, C, dim = 2, 4, 16
    kernel_size, stride, padding = 2, 2, 0

    # Deterministic scramblers (the module's `perm` and internally-built new_perm)
    perm = ImageScrambler(dim, seed=1)
    output_dims_init = (dim + 2 * padding - (kernel_size - 1) - 1) // stride + 1
    new_perm = ImageScrambler(output_dims_init, seed=2)

    idx_np, output_dims = build_gather_table(
        dim, kernel_size, stride, padding, perm, new_perm)

    key = jax.random.PRNGKey(0)
    x = jax.random.normal(key, (B, C, dim, dim), dtype=jnp.float32)

    y = deform_maxpool2d(x, idx_np, output_dims)
    y = jax.block_until_ready(y)

    # Pure-numpy reference of the same semantics (gather + window max).
    x_flat = np.asarray(x).reshape(B, C, dim * dim)
    ref = x_flat[:, :, idx_np].max(-1).reshape(B, C, output_dims, output_dims)

    assert y.shape == (B, C, output_dims, output_dims)
    np.testing.assert_allclose(np.asarray(y), ref, rtol=1e-6, atol=1e-6)
    print("KERNEL_OK")
</pallas_src>

<mosaic_0001>
module attributes {stable_mosaic.version = 11 : i64} {
  func.func @_deform_maxpool_kernel(%arg0: i32, %arg1: i32, %arg2: i32, %arg3: memref<8x256xf32, #tpu.memory_space<vmem>>, %arg4: memref<256x512xbf16, #tpu.memory_space<vmem>>, %arg5: memref<8x128xf32, #tpu.memory_space<vmem>>, %arg6: memref<8x512xf32, #tpu.memory_space<vmem>>) attributes {dimension_semantics = [#tpu.dimension_semantics<parallel>, #tpu.dimension_semantics<parallel>, #tpu.dimension_semantics<arbitrary>], iteration_bounds = array<i64: 1, 1, 1>, scalar_prefetch = 0 : i64, scratch_operands = 1 : i64, tpu.core_type = #tpu.core_type<tc>, window_params = [{transform_indices = @transform_0, window_bounds = array<i64: 8, 256>}, {transform_indices = @transform_1, window_bounds = array<i64: 256, 512>}, {transform_indices = @transform_2, window_bounds = array<i64: 8, 128>}]} {
    %c0_i32 = arith.constant 0 : i32
    %0 = arith.cmpi eq, %arg2, %c0_i32 : i32
    %1 = arith.extui %0 : i1 to i32
    %c0_i32_0 = arith.constant 0 : i32
    %2 = arith.cmpi ne, %1, %c0_i32_0 : i32
    scf.if %2 {
      %cst_12 = arith.constant 0.000000e+00 : f32
      %23 = vector.broadcast %cst_12 : f32 to vector<8x512xf32>
      %c0_13 = arith.constant 0 : index
      %c0_14 = arith.constant 0 : index
      %24 = vector.load %arg6[%c0_13, %c0_14] : memref<8x512xf32, #tpu.memory_space<vmem>>, vector<8x512xf32>
      tpu.vector_store %arg6[%c0_13, %c0_14], %23 {strides = array<i32>} : memref<8x512xf32, #tpu.memory_space<vmem>>, vector<8x512xf32>,
    } else {
    }
    %c0 = arith.constant 0 : index
    %c0_1 = arith.constant 0 : index
    %3 = vector.load %arg3[%c0, %c0_1] : memref<8x256xf32, #tpu.memory_space<vmem>>, vector<8x256xf32>
    %4 = arith.truncf %3 : vector<8x256xf32> to vector<8x256xbf16>
    %5 = arith.extf %4 : vector<8x256xbf16> to vector<8x256xf32>
    %6 = arith.subf %3, %5 : vector<8x256xf32>
    %7 = arith.truncf %6 : vector<8x256xf32> to vector<8x256xbf16>
    %8 = arith.extf %7 : vector<8x256xbf16> to vector<8x256xf32>
    %9 = arith.subf %6, %8 : vector<8x256xf32>
    %10 = arith.truncf %9 : vector<8x256xf32> to vector<8x256xbf16>
    %c0_2 = arith.constant 0 : index
    %c0_3 = arith.constant 0 : index
    %11 = vector.load %arg4[%c0_2, %c0_3] : memref<256x512xbf16, #tpu.memory_space<vmem>>, vector<256x512xbf16>
    %cst = arith.constant dense<0.000000e+00> : vector<8x512xf32>
    %12 = tpu.matmul %4, %11, %cst {dimension_numbers = #tpu.dot_dimension_numbers<[1], [0], [0], [1], [0, 0, 1, 1], [], []>} : vector<8x256xbf16>, vector<256x512xbf16>, vector<8x512xf32> -> vector<8x512xf32>
    %cst_4 = arith.constant dense<0.000000e+00> : vector<8x512xf32>
    %13 = tpu.matmul %7, %11, %cst_4 {dimension_numbers = #tpu.dot_dimension_numbers<[1], [0], [0], [1], [0, 0, 1, 1], [], []>} : vector<8x256xbf16>, vector<256x512xbf16>, vector<8x512xf32> -> vector<8x512xf32>
    %14 = arith.addf %12, %13 : vector<8x512xf32>
    %cst_5 = arith.constant dense<0.000000e+00> : vector<8x512xf32>
    %15 = tpu.matmul %10, %11, %cst_5 {dimension_numbers = #tpu.dot_dimension_numbers<[1], [0], [0], [1], [0, 0, 1, 1], [], []>} : vector<8x256xbf16>, vector<256x512xbf16>, vector<8x512xf32> -> vector<8x512xf32>
    %16 = arith.addf %14, %15 : vector<8x512xf32>
    %c0_6 = arith.constant 0 : index
    %c0_7 = arith.constant 0 : index
    %17 = vector.load %arg6[%c0_6, %c0_7] : memref<8x512xf32, #tpu.memory_space<vmem>>, vector<8x512xf32>
    %18 = arith.addf %17, %16 : vector<8x512xf32>
    %c0_8 = arith.constant 0 : index
    %c0_9 = arith.constant 0 : index
    %19 = vector.load %arg6[%c0_8, %c0_9] : memref<8x512xf32, #tpu.memory_space<vmem>>, vector<8x512xf32>
    tpu.vector_store %arg6[%c0_8, %c0_9], %18 {strides = array<i32>} : memref<8x512xf32, #tpu.memory_space<vmem>>, vector<8x512xf32>,
    %c0_i32_10 = arith.constant 0 : i32
    %20 = arith.cmpi eq, %arg2, %c0_i32_10 : i32
    %21 = arith.extui %20 : i1 to i32
    %c0_i32_11 = arith.constant 0 : i32
    %22 = arith.cmpi ne, %21, %c0_i32_11 : i32
    scf.if %22 {
      %c0_12 = arith.constant 0 : index
      %c0_13 = arith.constant 0 : index
      %23 = vector.load %arg6[%c0_12, %c0_13] : memref<8x512xf32, #tpu.memory_space<vmem>>, vector<8x512xf32>
      %24 = vector.extract_strided_slice %23 {offsets = [0, 0], sizes = [8, 128], strides = [1, 1]} : vector<8x512xf32> to vector<8x128xf32>
      %25 = vector.extract_strided_slice %23 {offsets = [0, 128], sizes = [8, 128], strides = [1, 1]} : vector<8x512xf32> to vector<8x128xf32>
      %26 = arith.maximumf %24, %25 : vector<8x128xf32>
      %27 = vector.extract_strided_slice %23 {offsets = [0, 256], sizes = [8, 128], strides = [1, 1]} : vector<8x512xf32> to vector<8x128xf32>
      %28 = arith.maximumf %26, %27 : vector<8x128xf32>
      %29 = vector.extract_strided_slice %23 {offsets = [0, 384], sizes = [8, 128], strides = [1, 1]} : vector<8x512xf32> to vector<8x128xf32>
      %30 = arith.maximumf %28, %29 : vector<8x128xf32>
      %c0_14 = arith.constant 0 : index
      %c0_15 = arith.constant 0 : index
      %31 = vector.load %arg5[%c0_14, %c0_15] : memref<8x128xf32, #tpu.memory_space<vmem>>, vector<8x128xf32>
      tpu.vector_store %arg5[%c0_14, %c0_15], %30 {strides = array<i32>} : memref<8x128xf32, #tpu.memory_space<vmem>>, vector<8x128xf32>,
    } else {
    }
    return
  }
  func.func @transform_0(%arg0: i32, %arg1: i32, %arg2: i32) -> (i32, i32) {
    %c0_i32 = arith.constant 0 : i32
    return %arg0, %arg2 : i32, i32
  }
  func.func @transform_1(%arg0: i32, %arg1: i32, %arg2: i32) -> (i32, i32) {
    %c0_i32 = arith.constant 0 : i32
    return %arg2, %arg1 : i32, i32
  }
  func.func @transform_2(%arg0: i32, %arg1: i32, %arg2: i32) -> (i32, i32) {
    %c0_i32 = arith.constant 0 : i32
    return %arg0, %arg1 : i32, i32
  }
}

</mosaic_0001>

<bundles_post_ra>
// kernel: tpu_custom_call.1
= control target key start
LH: loop header
LB: loop body
LE: loop exit
PB: predicated region body
PF: predicated region fallthrough
CT: control target
= control target key end

     0   :  { %7 = vsyncpa [#allocation4], 0  ;;  %s1591_s0 = inlined_call_operand.hbm [shape: f32[8,256], index: 0, kind: input, shape index: {}]   ;;  %s1592_s1 = inlined_call_operand.hbm [shape: bf16[256,512], index: 1, kind: input, shape index: {}]   ;;  %s1593_s2 = inlined_call_operand.hbm [shape: f32[8,128], index: 2, kind: output, shape index: {}]  }
   0x1   :  { %8 = vsyncpa [#allocation7], 0 }
   0x2   :  { %9 = vsyncpa [#allocation5], 0  ;;  %s15_s11 = sshll.u32 %s1591_s0, 4  ;;  %s1222_s12 = smov [#allocation3]   ;;  %s16_s11 = int_to_ptr.hbm [resolvable:$true] %s15_s11 }
   0x3   :  { %s17_s13 = sshll.u32 %s1222_s12, 4  ;;  %s25_s16 = sshll.u32 %s1592_s1, 4  ;;  %s18_s13 = int_to_ptr.vmem [resolvable:$true] %s17_s13  ;;  %s26_s16 = int_to_ptr.hbm [resolvable:$true] %s25_s16 }
   0x4   :  { %20 = dma.hbm_to_vmem [thread:$0]  %s16_s11, 256, %s18_s13, [#allocation4]  }
   0x5   :  { %s1223_s17 = smov [#allocation6]   ;;  %s1224_s19 = smov 256  }
   0x6   :  { %s27_s18 = sshll.u32 %s1223_s17, 4  ;;  %s1225_s20 = smov 16   ;;  %s28_s18 = int_to_ptr.vmem [resolvable:$true] %s27_s18 }
   0x7   :  { %33 = dma.hbm_to_vmem [thread:$0]  %s26_s16, 8192, %s28_s18, [#allocation7], %s1224_s19, %s1224_s19, %s1225_s20  }
   0x8   :  { %1216 = dma.done.wait [#allocation4], 256  }
   0x9   :  { %1217 = vsyncadd [#allocation4], 4294967040 }
   0xa   :  { %1218 = dma.done.wait [#allocation7], 8192  }
   0xb   :  { %1219 = vsyncadd [#allocation7], 4294959104  ;;  %v933_v0 = vld [vmem:[#allocation6 + $0xe0] sm:$0xf]  ;;  %v1105_v1 = vld [vmem:[#allocation6 + $0xec] sm:$0xf0] }
   0xc   :  { %v1061_v2 = vld [vmem:[#allocation6 + $0x1e0] sm:$0xf]  ;;  %v1248_v3 = vor.u32 %v1105_v1, %v933_v0  ;;  %v1137_v4 = vld [vmem:[#allocation6 + $0x1ec] sm:$0xf0]  ;;  %v1103_v5 = vld [vmem:[#allocation6 + $0xe4] sm:$0xf] }
   0xd   :  { %v935_v6 = vld [vmem:[#allocation6 + $0xf0] sm:$0xf0]  ;;  %v1250_v7 = vor.u32 %v1137_v4, %v1061_v2  ;;  %v1135_v9 = vld [vmem:[#allocation6 + $0x1e4] sm:$0xf]  ;;  %v917_v11 = vld [vmem:[#allocation6 + $0xc0] sm:$0xf] }
   0xe   :  { %v1252_v8 = vor.u32 %v1103_v5, %v935_v6  ;;  %v1063_v10 = vld [vmem:[#allocation6 + $0x1f0] sm:$0xf0]  ;;  %455 = vmatpush.bf16.msra.mxu0 %v1248_v3  ;;  %v1101_v13 = vld [vmem:[#allocation6 + $0xcc] sm:$0xf0]  ;;  %v1045_v14 = vld [vmem:[#allocation6 + $0x1c0] sm:$0xf] }
   0xf   :  { %v1255_v12 = vor.u32 %v1135_v9, %v1063_v10  ;;  %v1133_v15 = vld [vmem:[#allocation6 + $0x1cc] sm:$0xf0]  ;;  %468 = vmatpush.bf16.msra.mxu1 %v1250_v7  ;;  %v1259_v16 = vor.u32 %v1101_v13, %v917_v11  ;;  %v1099_v18 = vld [vmem:[#allocation6 + $0xc4] sm:$0xf]  ;;  %v919_v19 = vld [vmem:[#allocation6 + $0xd0] sm:$0xf0] }
  0x10   :  { %481 = vmatpush.bf16.msra.mxu2 %v1252_v8  ;;  %v1261_v17 = vor.u32 %v1133_v15, %v1045_v14  ;;  %v1131_v20 = vld [vmem:[#allocation6 + $0x1c4] sm:$0xf]  ;;  %v1264_v21 = vor.u32 %v1099_v18, %v919_v19  ;;  %v1047_v22 = vld [vmem:[#allocation6 + $0x1d0] sm:$0xf0]  ;;  %v901_v23 = vld [vmem:[#allocation6 + $0xa0] sm:$0xf] }
  0x11   :  { %494 = vmatpush.bf16.msra.mxu3 %v1255_v12  ;;  %v1097_v24 = vld [vmem:[#allocation6 + $0xac] sm:$0xf0]  ;;  %v1266_v25 = vor.u32 %v1131_v20, %v1047_v22  ;;  %v1029_v26 = vld [vmem:[#allocation6 + $0x1a0] sm:$0xf]  ;;  %v1095_v28 = vld [vmem:[#allocation6 + $0xa4] sm:$0xf] }
  0x12   :  { %v1129_v27 = vld [vmem:[#allocation6 + $0x1ac] sm:$0xf0]  ;;  %456 = vmatpush.bf16.msra.mxu0 %v1259_v16  ;;  %v1269_v29 = vor.u32 %v1097_v24, %v901_v23  ;;  %v903_v30 = vld [vmem:[#allocation6 + $0xb0] sm:$0xf0]  ;;  %v1127_v31 = vld [vmem:[#allocation6 + $0x1a4] sm:$0xf] }
  0x13   :  { %v1031_v32 = vld [vmem:[#allocation6 + $0x1b0] sm:$0xf0]  ;;  %469 = vmatpush.bf16.msra.mxu1 %v1261_v17  ;;  %v1273_v33 = vor.u32 %v1129_v27, %v1029_v26  ;;  %v1275_v34 = vor.u32 %v1095_v28, %v903_v30  ;;  %v885_v35 = vld [vmem:[#allocation6 + $0x80] sm:$0xf]  ;;  %v1093_v36 = vld [vmem:[#allocation6 + $0x8c] sm:$0xf0] }
  0x14   :  { %482 = vmatpush.bf16.msra.mxu2 %v1264_v21  ;;  %v1013_v37 = vld [vmem:[#allocation6 + $0x180] sm:$0xf]  ;;  %v1278_v38 = vor.u32 %v1127_v31, %v1031_v32  ;;  %v1125_v39 = vld [vmem:[#allocation6 + $0x18c] sm:$0xf0]  ;;  %v1091_v40 = vld [vmem:[#allocation6 + $0x84] sm:$0xf]  ;;  %v1281_v44 = vor.u32 %v1093_v36, %v885_v35 }
  0x15   :  { %495 = vmatpush.bf16.msra.mxu3 %v1266_v25  ;;  %v887_v41 = vld [vmem:[#allocation6 + $0x90] sm:$0xf0]  ;;  %v1123_v42 = vld [vmem:[#allocation6 + $0x184] sm:$0xf]  ;;  %v1285_v45 = vor.u32 %v1125_v39, %v1013_v37  ;;  %v869_v47 = vld [vmem:[#allocation6 + $0x60] sm:$0xf] }
  0x16   :  { %v1015_v43 = vld [vmem:[#allocation6 + $0x190] sm:$0xf0]  ;;  %457 = vmatpush.bf16.msra.mxu0 %v1269_v29  ;;  %v1287_v46 = vor.u32 %v1091_v40, %v887_v41  ;;  %v1089_v48 = vld [vmem:[#allocation6 + $0x6c] sm:$0xf0]  ;;  %v997_v49 = vld [vmem:[#allocation6 + $0x160] sm:$0xf] }
  0x17   :  { %470 = vmatpush.bf16.msra.mxu1 %v1273_v33  ;;  %v1290_v50 = vor.u32 %v1123_v42, %v1015_v43  ;;  %v1121_v51 = vld [vmem:[#allocation6 + $0x16c] sm:$0xf0]  ;;  %v1087_v52 = vld [vmem:[#allocation6 + $0x64] sm:$0xf]  ;;  %v871_v53 = vld [vmem:[#allocation6 + $0x70] sm:$0xf0]  ;;  %v1293_v56 = vor.u32 %v1089_v48, %v869_v47 }
  0x18   :  { %483 = vmatpush.bf16.msra.mxu2 %v1275_v34  ;;  %v1119_v54 = vld [vmem:[#allocation6 + $0x164] sm:$0xf]  ;;  %v999_v55 = vld [vmem:[#allocation6 + $0x170] sm:$0xf0]  ;;  %v1297_v57 = vor.u32 %v1121_v51, %v997_v49  ;;  %v1299_v58 = vor.u32 %v1087_v52, %v871_v53  ;;  %v853_v59 = vld [vmem:[#allocation6 + $0x40] sm:$0xf] }
  0x19   :  { %496 = vmatpush.bf16.msra.mxu3 %v1278_v38  ;;  %v1085_v60 = vld [vmem:[#allocation6 + $0x4c] sm:$0xf0]  ;;  %v981_v61 = vld [vmem:[#allocation6 + $0x140] sm:$0xf]  ;;  %v1302_v62 = vor.u32 %v1119_v54, %v999_v55  ;;  %v1083_v0 = vld [vmem:[#allocation6 + $0x44] sm:$0xf] }
  0x1a   :  { %458 = vmatpush.bf16.msra.mxu0 %v1281_v44  ;;  %v1117_v63 = vld [vmem:[#allocation6 + $0x14c] sm:$0xf0]  ;;  %v855_v1 = vld [vmem:[#allocation6 + $0x50] sm:$0xf0]  ;;  %v1115_v2 = vld [vmem:[#allocation6 + $0x144] sm:$0xf]  ;;  %v1305_v5 = vor.u32 %v1085_v60, %v853_v59 }
  0x1b   :  { %471 = vmatpush.bf16.msra.mxu1 %v1285_v45  ;;  %v983_v4 = vld [vmem:[#allocation6 + $0x150] sm:$0xf0]  ;;  %v1309_v6 = vor.u32 %v1117_v63, %v981_v61  ;;  %v1311_v9 = vor.u32 %v1083_v0, %v855_v1  ;;  %v837_v10 = vld [vmem:[#allocation6 + $0x20] sm:$0xf]  ;;  %v1081_v11 = vld [vmem:[#allocation6 + $0x2c] sm:$0xf0] }
  0x1c   :  { %484 = vmatpush.bf16.msra.mxu2 %v1287_v46  ;;  %v965_v13 = vld [vmem:[#allocation6 + $0x120] sm:$0xf]  ;;  %v1314_v14 = vor.u32 %v1115_v2, %v983_v4  ;;  %v1113_v15 = vld [vmem:[#allocation6 + $0x12c] sm:$0xf0]  ;;  %v1079_v18 = vld [vmem:[#allocation6 + $0x24] sm:$0xf]  ;;  %v1317_v23 = vor.u32 %v1081_v11, %v837_v10 }
  0x1d   :  { %497 = vmatpush.bf16.msra.mxu3 %v1290_v50  ;;  %v839_v19 = vld [vmem:[#allocation6 + $0x30] sm:$0xf0]  ;;  %v1111_v20 = vld [vmem:[#allocation6 + $0x124] sm:$0xf]  ;;  %v821_v24 = vld [vmem:[#allocation6] sm:$0xf]  ;;  %v1321_v27 = vor.u32 %v1113_v15, %v965_v13 }
  0x1e   :  { %459 = vmatpush.bf16.msra.mxu0 %v1293_v56  ;;  %v967_v22 = vld [vmem:[#allocation6 + $0x130] sm:$0xf0]  ;;  %v1077_v26 = vld [vmem:[#allocation6 + $0xc] sm:$0xf0]  ;;  %v1323_v28 = vor.u32 %v1079_v18, %v839_v19  ;;  %v949_v30 = vld [vmem:[#allocation6 + $0x100] sm:$0xf] }
  0x1f   :  { %472 = vmatpush.bf16.msra.mxu1 %v1297_v57  ;;  %v1109_v31 = vld [vmem:[#allocation6 + $0x10c] sm:$0xf0]  ;;  %v1075_v32 = vld [vmem:[#allocation6 + $0x4] sm:$0xf]  ;;  %v1326_v35 = vor.u32 %v1111_v20, %v967_v22  ;;  %v823_v36 = vld [vmem:[#allocation6 + $0x10] sm:$0xf0]  ;;  %v1329_v43 = vor.u32 %v1077_v26, %v821_v24 }
  0x20   :  { %485 = vmatpush.bf16.msra.mxu2 %v1299_v58  ;;  %v1107_v37 = vld [vmem:[#allocation6 + $0x104] sm:$0xf]  ;;  %v951_v39 = vld [vmem:[#allocation6 + $0x110] sm:$0xf0]  ;;  %v941_v40 = vld [vmem:[#allocation6 + $0xe8] sm:$0xf]  ;;  %v1333_v51 = vor.u32 %v1109_v31, %v949_v30  ;;  %v1335_v52 = vor.u32 %v1075_v32, %v823_v36 }
  0x21   :  { %498 = vmatpush.bf16.msra.mxu3 %v1302_v62  ;;  %v1106_v41 = vld [vmem:[#allocation6 + $0xf4] sm:$0xf0]  ;;  %v1069_v42 = vld [vmem:[#allocation6 + $0x1e8] sm:$0xf]  ;;  %v1104_v48 = vld [vmem:[#allocation6 + $0xec] sm:$0xf]  ;;  %v1338_v55 = vor.u32 %v1107_v37, %v951_v39 }
  0x22   :  { %460 = vmatpush.bf16.msra.mxu0 %v1305_v5  ;;  %v1138_v47 = vld [vmem:[#allocation6 + $0x1f4] sm:$0xf0]  ;;  %v943_v49 = vld [vmem:[#allocation6 + $0xf8] sm:$0xf0]  ;;  %v1136_v53 = vld [vmem:[#allocation6 + $0x1ec] sm:$0xf]  ;;  %v1340_v59 = vor.u32 %v1106_v41, %v941_v40 }
  0x23   :  { %473 = vmatpush.bf16.msra.mxu1 %v1309_v6  ;;  %v1071_v54 = vld [vmem:[#allocation6 + $0x1f8] sm:$0xf0]  ;;  %v1342_v60 = vor.u32 %v1138_v47, %v1069_v42  ;;  %v1344_v61 = vor.u32 %v1104_v48, %v943_v49  ;;  %v925_v63 = vld [vmem:[#allocation6 + $0xc8] sm:$0xf]  ;;  %v1102_v0 = vld [vmem:[#allocation6 + $0xd4] sm:$0xf0] }
  0x24   :  { %486 = vmatpush.bf16.msra.mxu2 %v1311_v9  ;;  %v1053_v1 = vld [vmem:[#allocation6 + $0x1c8] sm:$0xf]  ;;  %v1347_v2 = vor.u32 %v1136_v53, %v1071_v54  ;;  %v1134_v4 = vld [vmem:[#allocation6 + $0x1d4] sm:$0xf0]  ;;  %v1100_v10 = vld [vmem:[#allocation6 + $0xcc] sm:$0xf]  ;;  %v1353_v18 = vor.u32 %v1102_v0, %v925_v63 }
  0x25   :  { %499 = vmatpush.bf16.msra.mxu3 %v1314_v14  ;;  %v927_v11 = vld [vmem:[#allocation6 + $0xd8] sm:$0xf0]  ;;  %v1132_v13 = vld [vmem:[#allocation6 + $0x1cc] sm:$0xf]  ;;  %v1357_v19 = vor.u32 %v1134_v4, %v1053_v1  ;;  %v909_v22 = vld [vmem:[#allocation6 + $0xa8] sm:$0xf] }
  0x26   :  { %461 = vmatpush.bf16.msra.mxu0 %v1317_v23  ;;  %v1055_v15 = vld [vmem:[#allocation6 + $0x1d8] sm:$0xf0]  ;;  %v1359_v20 = vor.u32 %v1100_v10, %v927_v11  ;;  %v1098_v24 = vld [vmem:[#allocation6 + $0xb4] sm:$0xf0]  ;;  %v1037_v26 = vld [vmem:[#allocation6 + $0x1a8] sm:$0xf] }
  0x27   :  { %474 = vmatpush.bf16.msra.mxu1 %v1321_v27  ;;  %v1362_v30 = vor.u32 %v1132_v13, %v1055_v15  ;;  %v1130_v31 = vld [vmem:[#allocation6 + $0x1b4] sm:$0xf0]  ;;  %v1096_v32 = vld [vmem:[#allocation6 + $0xac] sm:$0xf]  ;;  %v911_v36 = vld [vmem:[#allocation6 + $0xb8] sm:$0xf0]  ;;  %v1365_v40 = vor.u32 %v1098_v24, %v909_v22 }
  0x28   :  { %487 = vmatpush.bf16.msra.mxu2 %v1323_v28  ;;  %v1128_v37 = vld [vmem:[#allocation6 + $0x1ac] sm:$0xf]  ;;  %v1039_v39 = vld [vmem:[#allocation6 + $0x1b8] sm:$0xf0]  ;;  %v893_v41 = vld [vmem:[#allocation6 + $0x88] sm:$0xf]  ;;  %v1369_v48 = vor.u32 %v1130_v31, %v1037_v26  ;;  %v1371_v49 = vor.u32 %v1096_v32, %v911_v36 }
  0x29   :  { %500 = vmatpush.bf16.msra.mxu3 %v1326_v35  ;;  %1627 = vst [vmem:[#allocation12_spill] sm:$0xff] %v1362_v30  ;;  %v50_v42 = vld [vmem:[#allocation3] sm:$0xff]  ;;  %v51_v47 = vld [vmem:[#allocation3 + $0x8] sm:$0xff]  ;;  %v1021_v54 = vld [vmem:[#allocation6 + $0x188] sm:$0xf]  ;;  %v1376_v1 = vor.u32 %v1128_v37, %v1039_v39  ;;  %s1226_s0 = smov [#allocation8]  }
  0x2a   :  { %462 = vmatpush.bf16.msra.mxu0 %v1329_v43  ;;  %1628 = vst [vmem:[#allocation13_spill] sm:$0xff] %v1365_v40  ;;  %v1094_v53 = vld [vmem:[#allocation6 + $0x94] sm:$0xf0]  ;;  %v1373_v0 = vpack.c.bf16 %v51_v47, %v50_v42  ;;  %v1092_v4 = vld [vmem:[#allocation6 + $0x8c] sm:$0xf]  ;;  %s806_s1 = sshll.u32 %s1226_s0, 4  ;;  %s807_s1 = int_to_ptr.vmem [resolvable:$true] %s806_s1 }
  0x2b   :  { %475 = vmatpush.bf16.msra.mxu1 %v1333_v51  ;;  %1629 = vst [vmem:[#allocation14_spill] sm:$0xff] %v1369_v48  ;;  %v1126_v63 = vld [vmem:[#allocation6 + $0x194] sm:$0xf0]  ;;  %v895_v10 = vld [vmem:[#allocation6 + $0x98] sm:$0xf0]  ;;  %v1381_v24 = vor.u32 %v1094_v53, %v893_v41  ;;  %s808_s23 = sshll.u32 %s1593_s2, 4  ;;  %s809_s23 = int_to_ptr.hbm [resolvable:$true] %s808_s23 }
  0x2c   :  { %488 = vmatpush.bf16.msra.mxu2 %v1335_v52  ;;  %1630 = vst [vmem:[#allocation15_spill] sm:$0xff] %v1371_v49  ;;  %v1124_v11 = vld [vmem:[#allocation6 + $0x18c] sm:$0xf]  ;;  %v1023_v13 = vld [vmem:[#allocation6 + $0x198] sm:$0xf0]  ;;  %v53_v15 = vunpack.c.l.bf16 %v1373_v0  ;;  %v54_v22 = vunpack.c.h.bf16 %v1373_v0  ;;  %v1383_v26 = vor.u32 %v1126_v63, %v1021_v54  ;;  %v1387_v31 = vor.u32 %v1092_v4, %v895_v10 }
  0x2d   :  { %501 = vmatpush.bf16.msra.mxu3 %v1338_v55  ;;  %1631 = vst [vmem:[#allocation16_spill] sm:$0xff] %v1376_v1  ;;  %v877_v32 = vld [vmem:[#allocation6 + $0x68] sm:$0xf]  ;;  %v1090_v36 = vld [vmem:[#allocation6 + $0x74] sm:$0xf0] }
  0x2e   :  { %507 = vmatpush.bf16.msrb.mxu0 %v1340_v59  ;;  %1632 = vst [vmem:[#allocation17_spill] sm:$0xff] %v1381_v24  ;;  %v1005_v37 = vld [vmem:[#allocation6 + $0x168] sm:$0xf]  ;;  %v1389_v39 = vsub.f32 %v50_v42, %v53_v15  ;;  %v1122_v41 = vld [vmem:[#allocation6 + $0x174] sm:$0xf0]  ;;  %v1401_v10 = vor.u32 %v1090_v36, %v877_v32 }
  0x2f   :  { %520 = vmatpush.bf16.msrb.mxu1 %v1342_v60  ;;  %1633 = vst [vmem:[#allocation18_spill] sm:$0xff] %v1383_v26  ;;  %v1088_v53 = vld [vmem:[#allocation6 + $0x6c] sm:$0xf]  ;;  %v879_v54 = vld [vmem:[#allocation6 + $0x78] sm:$0xf0]  ;;  %v1405_v42 = vor.u32 %v1122_v41, %v1005_v37 }
  0x30   :  { %533 = vmatpush.bf16.msrb.mxu2 %v1344_v61  ;;  %1634 = vst [vmem:[#allocation19_spill] sm:$0xff] %v1387_v31  ;;  %v1120_v63 = vld [vmem:[#allocation6 + $0x16c] sm:$0xf]  ;;  %v989_v15 = vld [vmem:[#allocation6 + $0x148] sm:$0xf] }
  0x31   :  { %546 = vmatpush.bf16.msrb.mxu3 %v1347_v2  ;;  %1635 = vst [vmem:[#allocation20_spill] sm:$0xff] %v1389_v39  ;;  %v1118_v32 = vld [vmem:[#allocation6 + $0x154] sm:$0xf0]  ;;  %v1084_v36 = vld [vmem:[#allocation6 + $0x4c] sm:$0xf] }
  0x32   :  { %508 = vmatpush.bf16.msrb.mxu0 %v1353_v18  ;;  %1639 = vst [vmem:[#allocation24_spill] sm:$0xff] %v1401_v10 }
  0x33   :  { %521 = vmatpush.bf16.msrb.mxu1 %v1357_v19  ;;  %1640 = vst [vmem:[#allocation25_spill] sm:$0xff] %v1405_v42 }
  0x34   :  { %534 = vmatpush.bf16.msrb.mxu2 %v1359_v20 }
  0x35   :  { %547 = vmatpush.bf16.msrb.mxu3 %v1362_v30  ;;  %v1391_v30 = vsub.f32 %v51_v47, %v54_v22  ;;  %v1407_v47 = vor.u32 %v1088_v53, %v879_v54  ;;  %v1419_v54 = vor.u32 %v1118_v32, %v989_v15  ;;  %v1078_v32 = vld [vmem:[#allocation6 + $0x14] sm:$0xf0] }
  0x36   :  { %509 = vmatpush.bf16.msrb.mxu0 %v1365_v40  ;;  %v1394_v40 = vor.u32 %v1124_v11, %v1023_v13  ;;  %v861_v11 = vld [vmem:[#allocation6 + $0x48] sm:$0xf]  ;;  %v1086_v13 = vld [vmem:[#allocation6 + $0x54] sm:$0xf0] }
  0x37   :  { %522 = vmatpush.bf16.msrb.mxu1 %v1369_v48  ;;  %1636 = vst [vmem:[#allocation21_spill] sm:$0xff] %v1391_v30  ;;  %v1007_v48 = vld [vmem:[#allocation6 + $0x178] sm:$0xf0]  ;;  %v1398_v4 = vpack.c.bf16 %v1391_v30, %v1389_v39  ;;  %v1415_v53 = vor.u32 %v1086_v13, %v861_v11  ;;  %v1112_v13 = vld [vmem:[#allocation6 + $0x12c] sm:$0xf] }
  0x38   :  { %535 = vmatpush.bf16.msrb.mxu2 %v1371_v49  ;;  %1637 = vst [vmem:[#allocation22_spill] sm:$0xff] %v1394_v40  ;;  %v1412_v39 = vor.u32 %v1120_v63, %v1007_v48  ;;  %v845_v48 = vld [vmem:[#allocation6 + $0x28] sm:$0xf]  ;;  %v1082_v63 = vld [vmem:[#allocation6 + $0x34] sm:$0xf0] }
  0x39   :  { %548 = vmatpush.bf16.msrb.mxu3 %v1376_v1  ;;  %1638 = vst [vmem:[#allocation23_spill] sm:$0xff] %v1398_v4  ;;  %v129_v22 = vunpack.c.l.b16 %v1398_v4  ;;  %v130_v30 = vunpack.c.h.b16 %v1398_v4  ;;  %v847_v11 = vld [vmem:[#allocation6 + $0x38] sm:$0xf0]  ;;  %v1427_v15 = vor.u32 %v1082_v63, %v845_v48  ;;  %v1108_v63 = vld [vmem:[#allocation6 + $0x10c] sm:$0xf] }
  0x3a   :  { %510 = vmatpush.bf16.msrb.mxu0 %v1381_v24  ;;  %1641 = vst [vmem:[#allocation26_spill] sm:$0xff] %v1407_v47  ;;  %v1116_v24 = vld [vmem:[#allocation6 + $0x14c] sm:$0xf]  ;;  %v831_v48 = vld [vmem:[#allocation6 + $0x18] sm:$0xf0] }
  0x3b   :  { %523 = vmatpush.bf16.msrb.mxu1 %v1383_v26  ;;  %1642 = vst [vmem:[#allocation27_spill] sm:$0xff] %v1412_v39  ;;  %v863_v26 = vld [vmem:[#allocation6 + $0x58] sm:$0xf0]  ;;  %v131_v37 = vpack.c.b16 %v129_v22, %v129_v22  ;;  %v132_v41 = vpack.c.b16 %v130_v30, %v130_v30  ;;  %v1114_v30 = vld [vmem:[#allocation6 + $0x134] sm:$0xf0] }
  0x3c   :  { %536 = vmatpush.bf16.msrb.mxu2 %v1387_v31  ;;  %v991_v31 = vld [vmem:[#allocation6 + $0x158] sm:$0xf0]  ;;  %1643 = vst [vmem:[#allocation28_spill] sm:$0xff] %v1415_v53  ;;  %v1421_v4 = vor.u32 %v1084_v36, %v863_v26  ;;  %v1080_v22 = vld [vmem:[#allocation6 + $0x2c] sm:$0xf] }
  0x3d   :  { %549 = vmatpush.bf16.msrb.mxu3 %v1394_v40  ;;  %1644 = vst [vmem:[#allocation29_spill] sm:$0xff] %v1419_v54  ;;  %v973_v40 = vld [vmem:[#allocation6 + $0x128] sm:$0xf]  ;;  %v1424_v1 = vor.u32 %v1116_v24, %v991_v31  ;;  %489 = vmatmul.bf16.vlgmr.msra.gmra.mxu2 %v131_v37  ;;  %v1433_v24 = vor.u32 %v1080_v22, %v847_v11  ;;  %v1647_v22 = vld [vmem:[#allocation14_spill] sm:$0xff] }
  0x3e   :  { %511 = vmatpush.bf16.msrb.mxu0 %v1401_v10  ;;  %502 = vmatmul.bf16.vlgmr.msra.gmra.mxu3 %v132_v41  ;;  %v1431_v26 = vor.u32 %v1114_v30, %v973_v40  ;;  %v829_v31 = vld [vmem:[#allocation6 + $0x8] sm:$0xf]  ;;  %v959_v10 = vld [vmem:[#allocation6 + $0x118] sm:$0xf0] }
  0x3f   :  { %524 = vmatpush.bf16.msrb.mxu1 %v1405_v42  ;;  %v975_v42 = vld [vmem:[#allocation6 + $0x138] sm:$0xf0]  ;;  %463 = vmatmul.bf16.vlgmr.msra.gmra.mxu0 %v131_v37  ;;  %v957_v36 = vld [vmem:[#allocation6 + $0x108] sm:$0xf] }
  0x40   :  { %537 = vmatpush.bf16.msrb.mxu2 %v1407_v47  ;;  %476 = vmatmul.bf16.vlgmr.msra.gmra.mxu1 %v132_v41  ;;  %v1110_v47 = vld [vmem:[#allocation6 + $0x114] sm:$0xf0]  ;;  %v1648_v11 = vld [vmem:[#allocation16_spill] sm:$0xff] }
  0x41   :  { %550 = vmatpush.bf16.msrb.mxu3 %v1412_v39  ;;  %v1436_v39 = vor.u32 %v1112_v13, %v975_v42  ;;  %v1443_v40 = vor.u32 %v1110_v47, %v957_v36  ;;  %v1448_v42 = vor.u32 %v1108_v63, %v959_v10  ;;  %v560_v10 = vunpack.c.l.b16 %v1373_v0  ;;  %v1649_v13 = vld [vmem:[#allocation17_spill] sm:$0xff]  ;;  %v1652_v36 = vld [vmem:[#allocation22_spill] sm:$0xff] }
  0x42   :  { %512 = vmatpush.bf16.msrb.mxu0 %v1415_v53  ;;  %v1076_v53 = vld [vmem:[#allocation6 + $0xc] sm:$0xf]  ;;  %v561_v47 = vunpack.c.h.b16 %v1373_v0  ;;  %v1654_v63 = vld [vmem:[#allocation25_spill] sm:$0xff] }
  0x43   :  { %525 = vmatpush.bf16.msrb.mxu1 %v1419_v54  ;;  %v1439_v54 = vor.u32 %v1078_v32, %v829_v31  ;;  %v1445_v30 = vor.u32 %v1076_v53, %v831_v48  ;;  %v1645_v0 = vld [vmem:[#allocation12_spill] sm:$0xff]  ;;  %v1646_v53 = vld [vmem:[#allocation13_spill] sm:$0xff]  ;;  %v1650_v31 = vld [vmem:[#allocation18_spill] sm:$0xff] }
  0x44   :  { %538 = vmatpush.bf16.msrb.mxu2 %v1421_v4  ;;  %v1651_v32 = vld [vmem:[#allocation19_spill] sm:$0xff]  ;;  %v1653_v48 = vld [vmem:[#allocation24_spill] sm:$0xff] }
  0x45   :  { %551 = vmatpush.bf16.msrb.mxu3 %v1424_v1 }
  0x46   :  { %513 = vmatpush.bf16.msrb.mxu0 %v1427_v15 }
  0x47   :  { %526 = vmatpush.bf16.msrb.mxu1 %v1431_v26 }
  0x48   :  { %539 = vmatpush.bf16.msrb.mxu2 %v1433_v24 }
  0x49   :  { %552 = vmatpush.bf16.msrb.mxu3 %v1436_v39 }
  0x4a   :  { %514 = vmatpush.bf16.msrb.mxu0 %v1439_v54 }
  0x4b   :  { %527 = vmatpush.bf16.msrb.mxu1 %v1443_v40 }
  0x4c   :  { %540 = vmatpush.bf16.msrb.mxu2 %v1445_v30 }
  0x4d   :  { %553 = vmatpush.bf16.msrb.mxu3 %v1448_v42 }
  0x4e   :  { %566 = vmatpush.bf16.msra.mxu0 %v1248_v3 }
  0x4f   :  { %579 = vmatpush.bf16.msra.mxu1 %v1250_v7  ;;  %541 = vmatmul.bf16.vlgmr.msrb.gmra.mxu2 %v131_v37 }
  0x50   :  { %592 = vmatpush.bf16.msra.mxu2 %v1252_v8  ;;  %515 = vmatmul.bf16.vlgmr.msrb.gmra.mxu0 %v131_v37  ;;  %v562_v37 = vpack.c.b16 %v560_v10, %v560_v10  ;;  %v1655_v10 = vld [vmem:[#allocation26_spill] sm:$0xff] }
  0x51   :  { %605 = vmatpush.bf16.msra.mxu3 %v1255_v12  ;;  %528 = vmatmul.bf16.vlgmr.msrb.gmra.mxu1 %v132_v41 }
  0x52   :  { %567 = vmatpush.bf16.msra.mxu0 %v1259_v16  ;;  %554 = vmatmul.bf16.vlgmr.msrb.gmra.mxu3 %v132_v41  ;;  %v563_v41 = vpack.c.b16 %v561_v47, %v561_v47  ;;  %v1656_v47 = vld [vmem:[#allocation27_spill] sm:$0xff] }
  0x53   :  { %580 = vmatpush.bf16.msra.mxu1 %v1261_v17 }
  0x54   :  { %593 = vmatpush.bf16.msra.mxu2 %v1264_v21 }
  0x55   :  { %606 = vmatpush.bf16.msra.mxu3 %v1266_v25 }
  0x56   :  { %568 = vmatpush.bf16.msra.mxu0 %v1269_v29 }
  0x57   :  { %581 = vmatpush.bf16.msra.mxu1 %v1273_v33 }
  0x58   :  { %594 = vmatpush.bf16.msra.mxu2 %v1275_v34 }
  0x59   :  { %607 = vmatpush.bf16.msra.mxu3 %v1278_v38 }
  0x5a   :  { %569 = vmatpush.bf16.msra.mxu0 %v1281_v44 }
  0x5b   :  { %582 = vmatpush.bf16.msra.mxu1 %v1285_v45 }
  0x5c   :  { %595 = vmatpush.bf16.msra.mxu2 %v1287_v46 }
  0x5d   :  { %608 = vmatpush.bf16.msra.mxu3 %v1290_v50 }
  0x5e   :  { %570 = vmatpush.bf16.msra.mxu0 %v1293_v56 }
  0x5f   :  { %583 = vmatpush.bf16.msra.mxu1 %v1297_v57 }
  0x60   :  { %596 = vmatpush.bf16.msra.mxu2 %v1299_v58 }
  0x61   :  { %609 = vmatpush.bf16.msra.mxu3 %v1302_v62 }
  0x62   :  { %571 = vmatpush.bf16.msra.mxu0 %v1305_v5 }
  0x63   :  { %584 = vmatpush.bf16.msra.mxu1 %v1309_v6 }
  0x64   :  { %597 = vmatpush.bf16.msra.mxu2 %v1311_v9 }
  0x65   :  { %610 = vmatpush.bf16.msra.mxu3 %v1314_v14 }
  0x66   :  { %572 = vmatpush.bf16.msra.mxu0 %v1317_v23 }
  0x67   :  { %585 = vmatpush.bf16.msra.mxu1 %v1321_v27 }
  0x68   :  { %598 = vmatpush.bf16.msra.mxu2 %v1323_v28 }
  0x69   :  { %611 = vmatpush.bf16.msra.mxu3 %v1326_v35 }
  0x6a   :  { %573 = vmatpush.bf16.msra.mxu0 %v1329_v43 }
  0x6b   :  { %586 = vmatpush.bf16.msra.mxu1 %v1333_v51 }
  0x6c   :  { %599 = vmatpush.bf16.msra.mxu2 %v1335_v52 }
  0x6d   :  { %612 = vmatpush.bf16.msra.mxu3 %v1338_v55  ;;  %574 = vmatmul.bf16.vlgmr.msra.gmra.mxu0 %v562_v37 }
  0x6e   :  { %618 = vmatpush.bf16.msrb.mxu0 %v1340_v59  ;;  %587 = vmatmul.bf16.vlgmr.msra.gmra.mxu1 %v563_v41 }
  0x6f   :  { %631 = vmatpush.bf16.msrb.mxu1 %v1342_v60  ;;  %600 = vmatmul.bf16.vlgmr.msra.gmra.mxu2 %v562_v37 }
  0x70   :  { %644 = vmatpush.bf16.msrb.mxu2 %v1344_v61  ;;  %613 = vmatmul.bf16.vlgmr.msra.gmra.mxu3 %v563_v41 }
  0x71   :  { %657 = vmatpush.bf16.msrb.mxu3 %v1347_v2 }
  0x72   :  { %619 = vmatpush.bf16.msrb.mxu0 %v1353_v18 }
  0x73   :  { %632 = vmatpush.bf16.msrb.mxu1 %v1357_v19 }
  0x74   :  { %645 = vmatpush.bf16.msrb.mxu2 %v1359_v20 }
  0x75   :  { %658 = vmatpush.bf16.msrb.mxu3 %v1645_v0 }
  0x76   :  { %620 = vmatpush.bf16.msrb.mxu0 %v1646_v53 }
  0x77   :  { %633 = vmatpush.bf16.msrb.mxu1 %v1647_v22  ;;  %v1657_v22 = vld [vmem:[#allocation28_spill] sm:$0xff] }
  0x78   :  { %646 = vmatpush.bf16.msrb.mxu2 %v1371_v49  ;;  %v1658_v49 = vld [vmem:[#allocation29_spill] sm:$0xff] }
  0x79   :  { %659 = vmatpush.bf16.msrb.mxu3 %v1648_v11 }
  0x7a   :  { %621 = vmatpush.bf16.msrb.mxu0 %v1649_v13 }
  0x7b   :  { %634 = vmatpush.bf16.msrb.mxu1 %v1650_v31 }
  0x7c   :  { %647 = vmatpush.bf16.msrb.mxu2 %v1651_v32 }
  0x7d   :  { %660 = vmatpush.bf16.msrb.mxu3 %v1652_v36 }
  0x7e   :  { %622 = vmatpush.bf16.msrb.mxu0 %v1653_v48 }
  0x7f   :  { %635 = vmatpush.bf16.msrb.mxu1 %v1654_v63 }
  0x80   :  { %648 = vmatpush.bf16.msrb.mxu2 %v1655_v10 }
  0x81   :  { %661 = vmatpush.bf16.msrb.mxu3 %v1656_v47 }
  0x82   :  { %623 = vmatpush.bf16.msrb.mxu0 %v1657_v22 }
  0x83   :  { %636 = vmatpush.bf16.msrb.mxu1 %v1658_v49 }
  0x84   :  { %649 = vmatpush.bf16.msrb.mxu2 %v1421_v4 }
  0x85   :  { %662 = vmatpush.bf16.msrb.mxu3 %v1424_v1 }
  0x86   :  { %624 = vmatpush.bf16.msrb.mxu0 %v1427_v15 }
  0x87   :  { %637 = vmatpush.bf16.msrb.mxu1 %v1431_v26 }
  0x88   :  { %650 = vmatpush.bf16.msrb.mxu2 %v1433_v24 }
  0x89   :  { %663 = vmatpush.bf16.msrb.mxu3 %v1436_v39 }
  0x8a   :  { %625 = vmatpush.bf16.msrb.mxu0 %v1439_v54 }
  0x8b   :  { %638 = vmatpush.bf16.msrb.mxu1 %v1443_v40 }
  0x8c   :  { %651 = vmatpush.bf16.msrb.mxu2 %v1445_v30 }
  0x8d   :  { %664 = vmatpush.bf16.msrb.mxu3 %v1448_v42  ;;  %626 = vmatmul.bf16.vlgmr.msrb.gmra.mxu0 %v562_v37 }
  0x8e   :  { %670 = vmatpush.bf16.msra.mxu0 %v1248_v3  ;;  %639 = vmatmul.bf16.vlgmr.msrb.gmra.mxu1 %v563_v41  ;;  %v1659_v3 = vld [vmem:[#allocation23_spill] sm:$0xff] }
  0x8f   :  { %683 = vmatpush.bf16.msra.mxu1 %v1250_v7  ;;  %652 = vmatmul.bf16.vlgmr.msrb.gmra.mxu2 %v562_v37  ;;  %v58_v7 = vunpack.c.l.bf16 %v1659_v3 }
  0x90   :  { %696 = vmatpush.bf16.msra.mxu2 %v1252_v8  ;;  %665 = vmatmul.bf16.vlgmr.msrb.gmra.mxu3 %v563_v41  ;;  %v59_v8 = vunpack.c.h.bf16 %v1659_v3 }
  0x91   :  { %709 = vmatpush.bf16.msra.mxu3 %v1255_v12  ;;  %v1660_v12 = vld [vmem:[#allocation20_spill] sm:$0xff] }
  0x92   :  { %671 = vmatpush.bf16.msra.mxu0 %v1259_v16  ;;  %v60_v16 = vsub.f32 %v1660_v12, %v58_v7 }
  0x93   :  { %684 = vmatpush.bf16.msra.mxu1 %v1261_v17  ;;  %v1661_v17 = vld [vmem:[#allocation21_spill] sm:$0xff] }
  0x94   :  { %697 = vmatpush.bf16.msra.mxu2 %v1264_v21  ;;  %v61_v21 = vsub.f32 %v1661_v17, %v59_v8 }
  0x95   :  { %710 = vmatpush.bf16.msra.mxu3 %v1266_v25  ;;  %v62_v25 = vpack.c.bf16 %v60_v16, %v60_v16 }
  0x96   :  { %672 = vmatpush.bf16.msra.mxu0 %v1269_v29  ;;  %v63_v29 = vpack.c.bf16 %v61_v21, %v61_v21 }
  0x97   :  { %685 = vmatpush.bf16.msra.mxu1 %v1273_v33  ;;  %v1662_v33 = vld [vmem:[#allocation14_spill] sm:$0xff] }
  0x98   :  { %698 = vmatpush.bf16.msra.mxu2 %v1275_v34  ;;  %v1663_v34 = vld [vmem:[#allocation15_spill] sm:$0xff] }
  0x99   :  { %711 = vmatpush.bf16.msra.mxu3 %v1278_v38 }
  0x9a   :  { %673 = vmatpush.bf16.msra.mxu0 %v1281_v44 }
  0x9b   :  { %686 = vmatpush.bf16.msra.mxu1 %v1285_v45 }
  0x9c   :  { %699 = vmatpush.bf16.msra.mxu2 %v1287_v46 }
  0x9d   :  { %712 = vmatpush.bf16.msra.mxu3 %v1290_v50 }
  0x9e   :  { %674 = vmatpush.bf16.msra.mxu0 %v1293_v56 }
  0x9f   :  { %687 = vmatpush.bf16.msra.mxu1 %v1297_v57 }
  0xa0   :  { %700 = vmatpush.bf16.msra.mxu2 %v1299_v58 }
  0xa1   :  { %713 = vmatpush.bf16.msra.mxu3 %v1302_v62 }
  0xa2   :  { %675 = vmatpush.bf16.msra.mxu0 %v1305_v5 }
  0xa3   :  { %688 = vmatpush.bf16.msra.mxu1 %v1309_v6 }
  0xa4   :  { %701 = vmatpush.bf16.msra.mxu2 %v1311_v9 }
  0xa5   :  { %714 = vmatpush.bf16.msra.mxu3 %v1314_v14 }
  0xa6   :  { %676 = vmatpush.bf16.msra.mxu0 %v1317_v23 }
  0xa7   :  { %689 = vmatpush.bf16.msra.mxu1 %v1321_v27 }
  0xa8   :  { %702 = vmatpush.bf16.msra.mxu2 %v1323_v28 }
  0xa9   :  { %715 = vmatpush.bf16.msra.mxu3 %v1326_v35 }
  0xaa   :  { %677 = vmatpush.bf16.msra.mxu0 %v1329_v43 }
  0xab   :  { %690 = vmatpush.bf16.msra.mxu1 %v1333_v51 }
  0xac   :  { %703 = vmatpush.bf16.msra.mxu2 %v1335_v52 }
  0xad   :  { %716 = vmatpush.bf16.msra.mxu3 %v1338_v55  ;;  %678 = vmatmul.bf16.vlgmr.msra.gmra.mxu0 %v62_v25 }
  0xae   :  { %722 = vmatpush.bf16.msrb.mxu0 %v1340_v59  ;;  %691 = vmatmul.bf16.vlgmr.msra.gmra.mxu1 %v63_v29 }
  0xaf   :  { %735 = vmatpush.bf16.msrb.mxu1 %v1342_v60  ;;  %704 = vmatmul.bf16.vlgmr.msra.gmra.mxu2 %v62_v25 }
  0xb0   :  { %748 = vmatpush.bf16.msrb.mxu2 %v1344_v61  ;;  %717 = vmatmul.bf16.vlgmr.msra.gmra.mxu3 %v63_v29 }
  0xb1   :  { %761 = vmatpush.bf16.msrb.mxu3 %v1347_v2 }
  0xb2   :  { %723 = vmatpush.bf16.msrb.mxu0 %v1353_v18 }
  0xb3   :  { %736 = vmatpush.bf16.msrb.mxu1 %v1357_v19 }
  0xb4   :  { %749 = vmatpush.bf16.msrb.mxu2 %v1359_v20 }
  0xb5   :  { %762 = vmatpush.bf16.msrb.mxu3 %v1645_v0 }
  0xb6   :  { %724 = vmatpush.bf16.msrb.mxu0 %v1646_v53 }
  0xb7   :  { %737 = vmatpush.bf16.msrb.mxu1 %v1662_v33 }
  0xb8   :  { %750 = vmatpush.bf16.msrb.mxu2 %v1663_v34 }
  0xb9   :  { %763 = vmatpush.bf16.msrb.mxu3 %v1648_v11 }
  0xba   :  { %725 = vmatpush.bf16.msrb.mxu0 %v1649_v13 }
  0xbb   :  { %738 = vmatpush.bf16.msrb.mxu1 %v1650_v31 }
  0xbc   :  { %751 = vmatpush.bf16.msrb.mxu2 %v1651_v32  ;;  %v464_v38 = vpop.f32.mrf.mxu0 }
  0xbd   :  { %764 = vmatpush.bf16.msrb.mxu3 %v1652_v36  ;;  %v477_v44 = vpop.f32.mrf.mxu1 }
  0xbe   :  { %726 = vmatpush.bf16.msrb.mxu0 %v1653_v48  ;;  %v478_v45 = vadd.f32 %v477_v44, %v464_v38 }
  0xbf   :  { %739 = vmatpush.bf16.msrb.mxu1 %v1654_v63 }
  0xc0   :  { %752 = vmatpush.bf16.msrb.mxu2 %v1655_v10  ;;  %v490_v46 = vpop.f32.mrf.mxu2 }
  0xc1   :  { %765 = vmatpush.bf16.msrb.mxu3 %v1656_v47  ;;  %v503_v50 = vpop.f32.mrf.mxu3 }
  0xc2   :  { %727 = vmatpush.bf16.msrb.mxu0 %v1657_v22  ;;  %v504_v56 = vadd.f32 %v503_v50, %v490_v46 }
  0xc3   :  { %740 = vmatpush.bf16.msrb.mxu1 %v1658_v49 }
  0xc4   :  { %753 = vmatpush.bf16.msrb.mxu2 %v1421_v4  ;;  %v466_v57 = vpop.f32.mrf.mxu0 }
  0xc5   :  { %766 = vmatpush.bf16.msrb.mxu3 %v1424_v1  ;;  %v479_v58 = vpop.f32.mrf.mxu1 }
  0xc6   :  { %728 = vmatpush.bf16.msrb.mxu0 %v1427_v15 }
  0xc7   :  { %741 = vmatpush.bf16.msrb.mxu1 %v1431_v26 }
  0xc8   :  { %754 = vmatpush.bf16.msrb.mxu2 %v1433_v24  ;;  %v492_v62 = vpop.f32.mrf.mxu2 }
  0xc9   :  { %767 = vmatpush.bf16.msrb.mxu3 %v1436_v39  ;;  %v505_v5 = vpop.f32.mrf.mxu3 }
  0xca   :  { %729 = vmatpush.bf16.msrb.mxu0 %v1439_v54 }
  0xcb   :  { %742 = vmatpush.bf16.msrb.mxu1 %v1443_v40 }
  0xcc   :  { %755 = vmatpush.bf16.msrb.mxu2 %v1445_v30 }
  0xcd   :  { %768 = vmatpush.bf16.msrb.mxu3 %v1448_v42  ;;  %730 = vmatmul.bf16.vlgmr.msrb.gmra.mxu0 %v62_v25  ;;  %v516_v6 = vpop.f32.mrf.mxu0 }
  0xce   :  { %743 = vmatmul.bf16.vlgmr.msrb.gmra.mxu1 %v63_v29  ;;  %v529_v9 = vpop.f32.mrf.mxu1 }
  0xcf   :  { %756 = vmatmul.bf16.vlgmr.msrb.gmra.mxu2 %v62_v25  ;;  %v530_v14 = vadd.f32 %v529_v9, %v516_v6 }
  0xd0   :  { %769 = vmatmul.bf16.vlgmr.msrb.gmra.mxu3 %v63_v29 }
  0xd2   :  { %v542_v23 = vpop.f32.mrf.mxu2 }
  0xd5   :  { %v555_v27 = vpop.f32.mrf.mxu3  ;;  %v518_v28 = vpop.f32.mrf.mxu0 }
  0xd6   :  { %v556_v35 = vadd.f32 %v555_v27, %v542_v23  ;;  %v531_v43 = vpop.f32.mrf.mxu1 }
  0xda   :  { %v544_v51 = vpop.f32.mrf.mxu2 }
  0xdd   :  { %v557_v52 = vpop.f32.mrf.mxu3 }
  0xea   :  { %v575_v55 = vpop.f32.mrf.mxu0 }
  0xeb   :  { %v576_v59 = vadd.f32 %v575_v55, %v478_v45  ;;  %v588_v60 = vpop.f32.mrf.mxu1 }
  0xed   :  { %v589_v61 = vadd.f32 %v588_v60, %v576_v59 }
  0xf2   :  { %v601_v2 = vpop.f32.mrf.mxu2  ;;  %v577_v20 = vpop.f32.mrf.mxu0 }
  0xf3   :  { %v602_v18 = vadd.f32 %v601_v2, %v504_v56  ;;  %v614_v19 = vpop.f32.mrf.mxu3  ;;  %v590_v49 = vpop.f32.mrf.mxu1 }
  0xf5   :  { %v615_v1 = vadd.f32 %v614_v19, %v602_v18 }
  0xfa   :  { %v603_v39 = vpop.f32.mrf.mxu2 }
  0xfb   :  { %v616_v4 = vpop.f32.mrf.mxu3 }
 0x10a   :  { %v627_v54 = vpop.f32.mrf.mxu0 }
 0x10b   :  { %v628_v15 = vadd.f32 %v627_v54, %v530_v14  ;;  %v640_v26 = vpop.f32.mrf.mxu1 }
 0x10d   :  { %v641_v24 = vadd.f32 %v640_v26, %v628_v15 }
 0x112   :  { %v653_v40 = vpop.f32.mrf.mxu2  ;;  %v629_v42 = vpop.f32.mrf.mxu0 }
 0x113   :  { %v666_v30 = vpop.f32.mrf.mxu3  ;;  %v642_v37 = vpop.f32.mrf.mxu1  ;;  %v654_v21 = vadd.f32 %v653_v40, %v556_v35 }
 0x115   :  { %v667_v38 = vadd.f32 %v666_v30, %v654_v21 }
 0x11a   :  { %v655_v41 = vpop.f32.mrf.mxu2 }
 0x11b   :  { %v668_v0 = vpop.f32.mrf.mxu3 }
 0x12a   :  { %v679_v53 = vpop.f32.mrf.mxu0 }
 0x12b   :  { %v692_v22 = vpop.f32.mrf.mxu1 }
 0x12c   :  { %v693_v11 = vadd.f32 %v692_v22, %v679_v53 }
 0x12e   :  { %v774_v63 = vadd.f32 %v693_v11, %v589_v61 }
 0x132   :  { %v705_v13 = vpop.f32.mrf.mxu2  ;;  %v681_v32 = vpop.f32.mrf.mxu0 }
 0x133   :  { %v718_v31 = vpop.f32.mrf.mxu3  ;;  %v694_v48 = vpop.f32.mrf.mxu1 }
 0x134   :  { %v719_v36 = vadd.f32 %v718_v31, %v705_v13 }
 0x136   :  { %v775_v10 = vadd.f32 %v719_v36, %v615_v1 }
 0x138   :  { %v797_v47 = vmax.f32 %v774_v63, %v775_v10 }
 0x13a   :  { %v707_v3 = vpop.f32.mrf.mxu2 }
 0x13b   :  { %v720_v7 = vpop.f32.mrf.mxu3 }
 0x14a   :  { %v731_v8 = vpop.f32.mrf.mxu0 }
 0x14b   :  { %v744_v12 = vpop.f32.mrf.mxu1 }
 0x14c   :  { %v745_v16 = vadd.f32 %v744_v12, %v731_v8 }
 0x14e   :  { %v776_v17 = vadd.f32 %v745_v16, %v641_v24 }
 0x150   :  { %v798_v25 = vmax.f32 %v797_v47, %v776_v17 }
 0x152   :  { %v757_v29 = vpop.f32.mrf.mxu2  ;;  %v733_v34 = vpop.f32.mrf.mxu0 }
 0x153   :  { %v770_v33 = vpop.f32.mrf.mxu3  ;;  %v746_v45 = vpop.f32.mrf.mxu1 }
 0x154   :  { %v771_v44 = vadd.f32 %v770_v33, %v757_v29 }
 0x156   :  { %v777_v46 = vadd.f32 %v771_v44, %v667_v38 }
 0x158   :  { %v799_v50 = vmax.f32 %v798_v25, %v777_v46 }
 0x15a   :  { %800 = vst [vmem:[#allocation8] sm:$0xff] %v799_v50  ;;  %v759_v56 = vpop.f32.mrf.mxu2 }
 0x15b   :  { %v772_v57 = vpop.f32.mrf.mxu3  ;;  %811 = dma.vmem_to_hbm [thread:$0]  %s807_s1, 128, %s809_s23, [#allocation5]  }
 0x15c   :  { %1220 = dma.done.wait [#allocation5], 128  }
 0x15d   :  { %1221 = vsyncadd [#allocation5], 4294967168 }
 0x15e   :  { %816 = vsyncpa [#allocation4], 1 }
 0x15f   :  { %817 = vsyncpa [#allocation7], 1 }
 0x160   :  { %818 = vsyncpa [#allocation5], 1 }

</bundles_post_ra>
